<compile_context>
chip_gen: v7x
topology: tpu7x:2x2x1
jax: 0.10.0
libtpu: 0.0.40
codegen_flags: <defaults>
</compile_context>

<pallas_src>
import jax
import jax.numpy as jnp
from jax.experimental import pallas as pl
from jax.experimental.pallas import tpu as pltpu


def _leaky_relu(x, negative_slope=0.01):
    # Matches torch.nn.functional.leaky_relu default slope.
    return jnp.where(x >= 0, x, negative_slope * x)


def _adversary_mlp_kernel(x_ref, w1_ref, b1_ref, w2_ref, b2_ref, w3_ref, b3_ref,
                          out_ref):
    """out = leaky_relu(leaky_relu(x@W1+b1)@W2+b2)@W3+b3 on the current tile."""
    # NOTE: for large hidden/batch sizes on v6e/v7x, cast x/W* to bf16 in the
    # wrapper (keep preferred_element_type=f32) — f32 matmuls lower to
    # multi-pass bf16 on the MXU. Kept f32 here for bit-parity with the f32
    # reference at these tiny shapes.
    h1 = jnp.dot(x_ref[...], w1_ref[...], preferred_element_type=jnp.float32)
    h1 = _leaky_relu(h1 + b1_ref[...])
    h2 = jnp.dot(h1, w2_ref[...], preferred_element_type=jnp.float32)
    h2 = _leaky_relu(h2 + b2_ref[...])
    o = jnp.dot(h2, w3_ref[...], preferred_element_type=jnp.float32)
    out_ref[...] = (o + b3_ref[...]).astype(out_ref.dtype)


def adversary_forward(x, params):
    """Equivalent of PyTorch Adversary.forward: returns pred = linear3(...)[0].

    Only row 0 of x affects the result (the MLP is row-wise), so we compute
    just that row: single grid-less kernel invocation, everything in VMEM.
    """
    w1, b1, w2, b2, w3, b3 = params
    out_dim = w3.shape[1]
    x0 = x[:1]  # (1, n_feat) — block shape equals full array dims, so it tiles fine.

    vmem = pl.BlockSpec(memory_space=pltpu.MemorySpace.VMEM)
    out = pl.pallas_call(
        _adversary_mlp_kernel,
        out_shape=jax.ShapeDtypeStruct((1, out_dim), jnp.float32),
        in_specs=[vmem] * 7,
        out_specs=vmem,
    )(x0, w1, b1, w2, b2, w3, b3)
    return out[0]


def adversary_mlp_batched(x, params, *, block_b=None):
    """Full (B, out_dim) MLP output, tiled over the batch axis.

    Structured for scale-up: batch grid axis is "parallel" (lets v7x's two
    TensorCores split it), weight/bias BlockSpecs use constant index_maps so
    they are loaded once and stay resident across batch tiles.
    """
    w1, b1, w2, b2, w3, b3 = params
    B, n_feat = x.shape
    out_dim = w3.shape[1]
    if block_b is None:
        block_b = B
    if B % block_b != 0:
        raise ValueError(f"batch {B} must be divisible by block_b {block_b}")
    # TPU tiling: block_b must be a multiple of 8 or equal to the full batch.
    if block_b != B and block_b % 8 != 0:
        raise ValueError(f"block_b {block_b} must be a multiple of 8")

    const2d = lambda i: (0, 0)
    grid = (B // block_b,)
    return pl.pallas_call(
        _adversary_mlp_kernel,
        out_shape=jax.ShapeDtypeStruct((B, out_dim), jnp.float32),
        grid=grid,
        in_specs=[
            pl.BlockSpec((block_b, n_feat), lambda i: (i, 0)),
            pl.BlockSpec(w1.shape, const2d),
            pl.BlockSpec(b1.shape, const2d),
            pl.BlockSpec(w2.shape, const2d),
            pl.BlockSpec(b2.shape, const2d),
            pl.BlockSpec(w3.shape, const2d),
            pl.BlockSpec(b3.shape, const2d),
        ],
        out_specs=pl.BlockSpec((block_b, out_dim), lambda i: (i, 0)),
        compiler_params=pltpu.CompilerParams(
            dimension_semantics=("parallel",)),
    )(x, w1, b1, w2, b2, w3, b3)


def init_params(key, n_feat, n_hid_1, n_hid_2, out_dim):
    """Deterministic init mimicking nn.Linear default (uniform +/- 1/sqrt(fan_in)).

    Weights stored as (in_features, out_features); biases as (1, out_features)
    so they live cleanly in VMEM as 2-D tiles.
    """
    keys = jax.random.split(key, 6)

    def lin(kw, kb, fan_in, fan_out):
        bound = 1.0 / jnp.sqrt(fan_in)
        w = jax.random.uniform(kw, (fan_in, fan_out), jnp.float32, -bound, bound)
        b = jax.random.uniform(kb, (1, fan_out), jnp.float32, -bound, bound)
        return w, b

    w1, b1 = lin(keys[0], keys[1], n_feat, n_hid_1)
    w2, b2 = lin(keys[2], keys[3], n_hid_1, n_hid_2)
    w3, b3 = lin(keys[4], keys[5], n_hid_2, out_dim)
    return (w1, b1, w2, b2, w3, b3)


def adversary_reference(x, params):
    """Pure-JAX reference of the PyTorch forward (pred = out[0])."""
    w1, b1, w2, b2, w3, b3 = params
    h1 = _leaky_relu(x @ w1 + b1)
    h2 = _leaky_relu(h1 @ w2 + b2)
    out = h2 @ w3 + b3
    return out[0]


def adversary_mlp_reference(x, params):
    """Pure-JAX reference of the full-batch MLP output."""
    w1, b1, w2, b2, w3, b3 = params
    h1 = _leaky_relu(x @ w1 + b1)
    h2 = _leaky_relu(h1 @ w2 + b2)
    return h2 @ w3 + b3


if __name__ == "__main__":
    # Small shapes consistent with the module's forward pass.
    batch, n_feat, n_hid_1, n_hid_2, out_dim = 8, 32, 64, 32, 16

    key = jax.random.PRNGKey(0)
    kx, kp = jax.random.split(key)
    x = jax.random.normal(kx, (batch, n_feat), dtype=jnp.float32)
    params = init_params(kp, n_feat, n_hid_1, n_hid_2, out_dim)

    # --- module-equivalent path: pred = linear3(...)[0] -------------------
    pred = jax.block_until_ready(adversary_forward(x, params))
    ref = adversary_reference(x, params)
    assert pred.shape == (out_dim,), pred.shape
    assert jnp.allclose(pred, ref, atol=1e-5, rtol=1e-5), (pred, ref)

    # --- batched / gridded path (scale-up structure: parallel batch axis,
    #     resident weights) — verified on a 2-tile grid ---------------------
    xb = jax.random.normal(jax.random.PRNGKey(1), (16, n_feat), dtype=jnp.float32)
    full = jax.block_until_ready(adversary_mlp_batched(xb, params, block_b=8))
    full_ref = adversary_mlp_reference(xb, params)
    assert full.shape == (16, out_dim), full.shape
    assert jnp.allclose(full, full_ref, atol=1e-5, rtol=1e-5)

    print("KERNEL_OK")
</pallas_src>

<mosaic_0001>
module attributes {stable_mosaic.version = 11 : i64} {
  func.func @_adversary_mlp_kernel(%arg0: memref<1x32xf32, #tpu.memory_space<vmem>>, %arg1: memref<32x64xf32, #tpu.memory_space<vmem>>, %arg2: memref<1x64xf32, #tpu.memory_space<vmem>>, %arg3: memref<64x32xf32, #tpu.memory_space<vmem>>, %arg4: memref<1x32xf32, #tpu.memory_space<vmem>>, %arg5: memref<32x16xf32, #tpu.memory_space<vmem>>, %arg6: memref<1x16xf32, #tpu.memory_space<vmem>>, %arg7: memref<1x16xf32, #tpu.memory_space<vmem>>) attributes {dimension_semantics = [], scalar_prefetch = 0 : i64, scratch_operands = 0 : i64, tpu.core_type = #tpu.core_type<tc>} {
    %c0 = arith.constant 0 : index
    %c0_0 = arith.constant 0 : index
    %0 = vector.load %arg0[%c0, %c0_0] : memref<1x32xf32, #tpu.memory_space<vmem>>, vector<1x32xf32>
    %c0_1 = arith.constant 0 : index
    %c0_2 = arith.constant 0 : index
    %1 = vector.load %arg1[%c0_1, %c0_2] : memref<32x64xf32, #tpu.memory_space<vmem>>, vector<32x64xf32>
    %cst = arith.constant dense<0.000000e+00> : vector<1x64xf32>
    %2 = tpu.matmul %0, %1, %cst {dimension_numbers = #tpu.dot_dimension_numbers<[1], [0], [0], [1], [0, 0, 1, 1], [], []>} : vector<1x32xf32>, vector<32x64xf32>, vector<1x64xf32> -> vector<1x64xf32>
    %c0_3 = arith.constant 0 : index
    %c0_4 = arith.constant 0 : index
    %3 = vector.load %arg2[%c0_3, %c0_4] : memref<1x64xf32, #tpu.memory_space<vmem>>, vector<1x64xf32>
    %4 = arith.addf %2, %3 : vector<1x64xf32>
    %cst_5 = arith.constant 0.000000e+00 : f32
    %5 = vector.broadcast %cst_5 : f32 to vector<1x64xf32>
    %6 = arith.cmpf oge, %4, %5 : vector<1x64xf32>
    %cst_6 = arith.constant 0.00999999977 : f32
    %7 = vector.broadcast %cst_6 : f32 to vector<1x64xf32>
    %8 = arith.mulf %7, %4 : vector<1x64xf32>
    %9 = arith.select %6, %4, %8 : vector<1x64xi1>, vector<1x64xf32>
    %c0_7 = arith.constant 0 : index
    %c0_8 = arith.constant 0 : index
    %10 = vector.load %arg3[%c0_7, %c0_8] : memref<64x32xf32, #tpu.memory_space<vmem>>, vector<64x32xf32>
    %cst_9 = arith.constant dense<0.000000e+00> : vector<1x32xf32>
    %11 = tpu.matmul %9, %10, %cst_9 {dimension_numbers = #tpu.dot_dimension_numbers<[1], [0], [0], [1], [0, 0, 1, 1], [], []>} : vector<1x64xf32>, vector<64x32xf32>, vector<1x32xf32> -> vector<1x32xf32>
    %c0_10 = arith.constant 0 : index
    %c0_11 = arith.constant 0 : index
    %12 = vector.load %arg4[%c0_10, %c0_11] : memref<1x32xf32, #tpu.memory_space<vmem>>, vector<1x32xf32>
    %13 = arith.addf %11, %12 : vector<1x32xf32>
    %cst_12 = arith.constant 0.000000e+00 : f32
    %14 = vector.broadcast %cst_12 : f32 to vector<1x32xf32>
    %15 = arith.cmpf oge, %13, %14 : vector<1x32xf32>
    %cst_13 = arith.constant 0.00999999977 : f32
    %16 = vector.broadcast %cst_13 : f32 to vector<1x32xf32>
    %17 = arith.mulf %16, %13 : vector<1x32xf32>
    %18 = arith.select %15, %13, %17 : vector<1x32xi1>, vector<1x32xf32>
    %c0_14 = arith.constant 0 : index
    %c0_15 = arith.constant 0 : index
    %19 = vector.load %arg5[%c0_14, %c0_15] : memref<32x16xf32, #tpu.memory_space<vmem>>, vector<32x16xf32>
    %cst_16 = arith.constant dense<0.000000e+00> : vector<1x16xf32>
    %20 = tpu.matmul %18, %19, %cst_16 {dimension_numbers = #tpu.dot_dimension_numbers<[1], [0], [0], [1], [0, 0, 1, 1], [], []>} : vector<1x32xf32>, vector<32x16xf32>, vector<1x16xf32> -> vector<1x16xf32>
    %c0_17 = arith.constant 0 : index
    %c0_18 = arith.constant 0 : index
    %21 = vector.load %arg6[%c0_17, %c0_18] : memref<1x16xf32, #tpu.memory_space<vmem>>, vector<1x16xf32>
    %22 = arith.addf %20, %21 : vector<1x16xf32>
    %c0_19 = arith.constant 0 : index
    %c0_20 = arith.constant 0 : index
    %23 = vector.load %arg7[%c0_19, %c0_20] : memref<1x16xf32, #tpu.memory_space<vmem>>, vector<1x16xf32>
    tpu.vector_store %arg7[%c0_19, %c0_20], %22 {strides = array<i32>} : memref<1x16xf32, #tpu.memory_space<vmem>>, vector<1x16xf32>,
    return
  }
}

</mosaic_0001>

<bundles_post_ra>
// kernel: tpu_custom_call.1
= control target key start
LH: loop header
LB: loop body
LE: loop exit
PB: predicated region body
PF: predicated region fallthrough
CT: control target
= control target key end

     0   :  { %v405_v3 = vmov 0.0|0.0   ;;  %vm406_vm0 = vmmov 0   ;;  %v407_v6 = vmov 0.0   ;;  %s526_s0 = inlined_call_operand.vmem [shape: f32[1,32], index: 0, kind: input, shape index: {}]   ;;  %s527_s1 = inlined_call_operand.vmem [shape: f32[32,64], index: 1, kind: input, shape index: {}]   ;;  %s528_s2 = inlined_call_operand.vmem [shape: f32[1,64], index: 2, kind: input, shape index: {}]   ;;  %s529_s3 = inlined_call_operand.vmem [shape: f32[64,32], index: 3, kind: input, shape index: {}]   ;;  %s530_s4 = inlined_call_operand.vmem [shape: f32[1,32], index: 4, kind: input, shape index: {}]   ;;  %s531_s5 = inlined_call_operand.vmem [shape: f32[32,16], index: 5, kind: input, shape index: {}]   ;;  %s532_s6 = inlined_call_operand.vmem [shape: f32[1,16], index: 6, kind: input, shape index: {}]   ;;  %s533_s7 = inlined_call_operand.hbm [shape: f32[1,16], index: 7, kind: output, shape index: {}]  }
   0x1   :  { %v28_v0 = vld [vmem:[%s527_s1] sm:$0xff]  ;;  %v29_v1 = vld [vmem:[%s527_s1 + $0x8] sm:$0xff]  ;;  %v30_v2 = vld [vmem:[%s527_s1 + $0x10] sm:$0xff]  ;;  %353 = vmatprep.subr.bf16.mxu0 %v405_v3  ;;  %320 = vmatprep.mubr.msk.f32.mxu0 %vm406_vm0, %v407_v6 }
   0x2   :  { %v354_v4 = vpack.c.bf16 %v29_v1, %v28_v0  ;;  %v31_v5 = vld [vmem:[%s527_s1 + $0x18] sm:$0xff]  ;;  %v110_v7 = vld [vmem:[%s529_s3] sm:$0xff]  ;;  %359 = vmatprep.subr.bf16.mxu1 %v405_v3  ;;  %v111_v8 = vld [vmem:[%s529_s3 + $0x8] sm:$0xff]  ;;  %339 = vmatprep.mubr.msk.f32.mxu1 %vm406_vm0, %v407_v6 }
   0x3   :  { %v112_v9 = vld [vmem:[%s529_s3 + $0x10] sm:$0xff]  ;;  %v113_v10 = vld [vmem:[%s529_s3 + $0x18] sm:$0xff]  ;;  %v357_v11 = vpack.c.bf16 %v31_v5, %v30_v2  ;;  %v360_v12 = vpack.c.bf16 %v111_v8, %v110_v7 }
   0x4   :  { %355 = vmatpush3.bf16.msra.mxu0 %v354_v4 }
   0x5   :  { %356 = vmatprep.subr.bf16.mxu0 %v405_v3 }
   0x6   :  { %12 = vsyncpa [#allocation3], 0  ;;  %361 = vmatpush3.bf16.msra.mxu1 %v360_v12  ;;  %v363_v13 = vpack.c.bf16 %v113_v10, %v112_v9  ;;  %v114_v14 = vld [vmem:[%s529_s3 + $0x20] sm:$0xff]  ;;  %v115_v15 = vld [vmem:[%s529_s3 + $0x28] sm:$0xff]  ;;  %vm33_vm1 = vcmask 261120   ;;  %vm119_vm3 = vcmask 523264  }
   0x7   :  { %362 = vmatprep.subr.bf16.mxu1 %v405_v3  ;;  %v27_v16 = vld [vmem:[%s526_s0] sm:$0x1]  ;;  %v366_v17 = vpack.c.bf16 %v115_v15, %v114_v14  ;;  %v116_v18 = vld [vmem:[%s529_s3 + $0x30] sm:$0xff]  ;;  %v117_v19 = vld [vmem:[%s529_s3 + $0x38] sm:$0xff]  ;;  %s408_s14 = smov [#allocation2]   ;;  %vm274_vm5 = vcmask 122880  }
   0x8   :  { %358 = vmatpush3.bf16.msra.mxu0 %v357_v11  ;;  %v369_v20 = vpack.c.bf16 %v117_v19, %v116_v18  ;;  %v196_v21 = vld [vmem:[%s531_s5] sm:$0xff]  ;;  %v197_v22 = vld [vmem:[%s531_s5 + $0x8] sm:$0xff]  ;;  %v198_v30 = vld [vmem:[%s531_s5 + $0x10] sm:$0xff] }
   0x9   :  { %371 = vmatprep.subr.bf16.mxu0 %v405_v3  ;;  %v372_v23 = vpack.c.bf16 %v197_v22, %v196_v21  ;;  %v32_v24 = vld [vmem:[%s528_s2] sm:$0x1]  ;;  %v199_v31 = vld [vmem:[%s531_s5 + $0x18] sm:$0xff]  ;;  %s282_s5 = sshll.u32 %s408_s14, 4  ;;  %s283_s5 = int_to_ptr.vmem [resolvable:$true] %s282_s5 }
   0xa   :  { %364 = vmatpush3.bf16.msra.mxu1 %v363_v13  ;;  %v375_v32 = vpack.c.bf16 %v199_v31, %v198_v30  ;;  %v118_v33 = vld [vmem:[%s530_s4] sm:$0x1]  ;;  %s381_s4 = scalar_lea.vmem %s283_s5, 16  ;;  %s385_s15 = scalar_lea.vmem %s283_s5, 32 }
   0xb   :  { %321 = vmatmul.mubr.msk.f32.vlgmr.msra.gmra.mrb[0].mxu0 %vm33_vm1, %v27_v16  ;;  %365 = vmatprep.subr.bf16.mxu1 %v405_v3  ;;  %v200_v39 = vld [vmem:[%s532_s6] sm:$0x1]  ;;  %p382_p0 = scmp.ne.s32.totalorder %s283_s5, %s381_s4  ;;  %p386_p1 = scmp.lt.s32.totalorder %s283_s5, %s283_s5 }
   0xc   :  { %350 = vmatprep.mubr.msk.f32.mxu0 %vm406_vm0, %v407_v6  ;;  %373 = vmatpush3.bf16.msra.mxu0 %v372_v23  ;;  %p387_p2 = scmp.lt.s32.totalorder %s385_s15, %s381_s4 }
   0xd   :  { %374 = vmatprep.subr.bf16.mxu0 %v405_v3 }
   0xe   :  { %367 = vmatpush3.bf16.msra.mxu1 %v366_v17  ;;  %p388_p3 = por %p387_p2, %p386_p1 }
   0xf   :  { %368 = vmatprep.subr.bf16.mxu1 %v405_v3 }
  0x10   :  { %376 = vmatpush3.bf16.msra.mxu0 %v375_v32  ;;  %p389_p4 = pnand %p388_p3, %p382_p0 }
  0x12   :  { %370 = vmatpush3.bf16.msra.mxu1 %v369_v20 }
  0xde   :  { %v103_v25 = vpop.f32.mrb[0].mxu0 }
  0xdf   :  { %v104_v26 = vadd.f32 %v103_v25, %v32_v24  ;;  %v322_v27 = vpop.f32.mrb[1].mxu0 }
  0xe1   :  { %vm107_vm2 = vcmp.ge.f32.partialorder %v104_v26, 0.0  ;;  %v108_v28 = vmul.f32 0.01, %v104_v26 }
  0xe3   :  { %v109_v29 = vsel %vm107_vm2, %v104_v26, %v108_v28 }
  0xe4   :  { %340 = vmatmul.mubr.msk.f32.vlgmr.msra.gmra.mrb[0].mxu1 %vm119_vm3, %v109_v29 }
 0x1b7   :  { %v189_v34 = vpop.f32.mrb[0].mxu1 }
 0x1b8   :  { %v190_v35 = vadd.f32 %v189_v34, %v118_v33  ;;  %v341_v36 = vpop.f32.mrb[1].mxu1 }
 0x1ba   :  { %vm193_vm4 = vcmp.ge.f32.partialorder %v190_v35, 0.0  ;;  %v194_v37 = vmul.f32 0.01, %v190_v35 }
 0x1bc   :  { %v195_v38 = vsel %vm193_vm4, %v190_v35, %v194_v37 }
 0x1bd   :  { %351 = vmatmul.mubr.msk.f32.vlgmr.msra.gmra.mrb[2].mxu0 %vm33_vm1, %v195_v38 }
 0x290   :  { %v270_v40 = vpop.f32.mrb[2].mxu0 }
 0x291   :  { %v271_v41 = vadd.f32 %v270_v40, %v200_v39  ;;  %v352_v42 = vpop.f32.mrb[3].mxu0 }
 0x293   :  { %275 = vst.msk [vmem:[#allocation2] sm:$0x1] %vm274_vm5, %v271_v41 }
 0x294   :  { %392 = shalt.err (!%p389_p4)
}
 0x295   :  { %s393_s6 = scalar_lea.hbm %s533_s7, 16 }
 0x296   :  { %p394_p5 = scmp.ne.s32.totalorder %s533_s7, %s393_s6  ;;  %p397_p6 = scmp.lt.u32.totalorder %s393_s6, %s533_s7 }
 0x298   :  { %p399_p7 = pnand %p397_p6, %p394_p5 }
 0x29a   :  { %402 = shalt.err (!%p399_p7)
}
 0x29b   :  { %285 = dma.vmem_to_hbm [thread:$0]  %s283_s5, 16, %s533_s7, [#allocation3]  }
 0x29c   :  { %403 = dma.done.wait [#allocation3], 16  }
 0x29d   :  { %404 = vsyncadd [#allocation3], 4294967280 }
 0x29e   :  { %289 = vsyncpa [#allocation3], 1 }

</bundles_post_ra>
